<compile_context>
chip_gen: v6e
topology: v6e:2x2x1
jax: 0.10.0
libtpu: 0.0.40
codegen_flags: <defaults>
</compile_context>

<pallas_src>
import jax
import jax.numpy as jnp
from jax.experimental import pallas as pl
from jax.experimental.pallas import tpu as pltpu


def _stats_kernel(x_ref, s_ref, g_ref, s_acc, g_acc):
    """Per-image partial stats: rowsum(X) and Gram X @ X^T, accumulated over spatial tiles."""
    t = pl.program_id(1)

    @pl.when(t == 0)
    def _():
        s_acc[...] = jnp.zeros_like(s_acc)
        g_acc[...] = jnp.zeros_like(g_acc)

    x = x_ref[...]                                                    # (Cin, tm)
    s_acc[...] += jnp.sum(x.astype(jnp.float32), axis=1, keepdims=True)
    g_acc[...] += jax.lax.dot_general(                                # X @ X^T -> (Cin, Cin)
        x, x, (((1,), (1,)), ((), ())), preferred_element_type=jnp.float32)

    @pl.when(t == pl.num_programs(1) - 1)
    def _():
        s_ref[...] = s_acc[...]
        g_ref[...] = g_acc[...]


def _conv_bn_relu_kernel(x_ref, w_ref, b_ref, o_ref):
    """Fused pointwise conv (scaled W @ X) + BN shift + ReLU; lane-dense (Cout, tm) output."""
    y = jnp.dot(w_ref[...], x_ref[...], preferred_element_type=jnp.float32)  # (Cout, tm)
    o_ref[...] = jnp.maximum(y + b_ref[...], 0.0).astype(o_ref.dtype)


def _pick_spatial_tile(hw, target):
    """Largest multiple of 128 that divides hw and is <= target (fallback: full extent)."""
    if hw % 128 != 0:
        return hw
    t = max(min((target // 128) * 128, hw), 128)
    while hw % t != 0:
        t -= 128
    return t


def _vmem_limit_bytes(cin, cout, tm, itemsize):
    # double-buffered input + output tiles, plus resident weight/bias blocks + headroom.
    need = 2 * (cin * tm + cout * tm) * itemsize + 2 * (cout * cin + cout) * 4
    need += 4 << 20
    return int(min(max(need, 32 << 20), 64 << 20))


def point_conv(x_nchw, weight, gamma, beta, eps=1e-5, tm_target=1024):
    N, Cin, H, W = x_nchw.shape
    Cout = weight.shape[0]
    HW = H * W
    M = N * HW

    tm = _pick_spatial_tile(HW, tm_target)
    grid = (N, HW // tm)

    x3 = x_nchw.reshape(N, Cin, HW)                       # free view, no transpose
    w2 = weight.reshape(Cout, Cin).astype(jnp.float32)

    vmem_limit = _vmem_limit_bytes(Cin, Cout, tm, jnp.dtype(x3.dtype).itemsize)

    # ---- Pass 1: per-image partial stats (rowsum(X), X X^T), batch axis 'parallel'. ----
    s_parts, g_parts = pl.pallas_call(
        _stats_kernel,
        out_shape=(jax.ShapeDtypeStruct((N, Cin, 1), jnp.float32),
                   jax.ShapeDtypeStruct((N, Cin, Cin), jnp.float32)),
        grid_spec=pltpu.PrefetchScalarGridSpec(
            num_scalar_prefetch=0,
            grid=grid,
            in_specs=[pl.BlockSpec((pl.Squeezed(), Cin, tm), lambda n, t: (n, 0, t))],
            out_specs=(pl.BlockSpec((pl.Squeezed(), Cin, 1), lambda n, t: (n, 0, 0)),
                       pl.BlockSpec((pl.Squeezed(), Cin, Cin), lambda n, t: (n, 0, 0))),
            scratch_shapes=[pltpu.VMEM((Cin, 1), jnp.float32),
                            pltpu.VMEM((Cin, Cin), jnp.float32)]),
        compiler_params=pltpu.CompilerParams(
            dimension_semantics=("parallel", "arbitrary"),
            vmem_limit_bytes=vmem_limit),
    )(x3)

    # ---- Tiny glue: fold batch mean / biased var into a scaled weight + shift. ----
    # Note: E[y^2]-E[y]^2 in f32 can cancel if channel means are huge relative to std;
    # acceptable here, would need centered/compensated sums otherwise.
    s_total = jnp.sum(s_parts, axis=0)[:, 0]              # (Cin,)
    gram = jnp.sum(g_parts, axis=0)                       # (Cin, Cin)
    mean = (w2 @ s_total) / M                             # (Cout,)
    sumsq = jnp.sum((w2 @ gram) * w2, axis=1)             # diag(W G W^T) -> (Cout,)
    var = jnp.maximum(sumsq / M - mean * mean, 0.0)       # biased batch var (PyTorch BN norm)
    inv_std = jax.lax.rsqrt(var + eps)
    scale = gamma.astype(jnp.float32) * inv_std
    shift = beta.astype(jnp.float32) - mean * scale
    w_scaled = (w2 * scale[:, None]).astype(x3.dtype)     # fold BN scale into the weight
    shift_col = shift.reshape(Cout, 1)

    # ---- Pass 2: fused conv + BN affine + ReLU, fully 'parallel' grid. ----
    out3 = pl.pallas_call(
        _conv_bn_relu_kernel,
        out_shape=jax.ShapeDtypeStruct((N, Cout, HW), x3.dtype),
        grid_spec=pltpu.PrefetchScalarGridSpec(
            num_scalar_prefetch=0,
            grid=grid,
            in_specs=[pl.BlockSpec((pl.Squeezed(), Cin, tm), lambda n, t: (n, 0, t)),
                      pl.BlockSpec((Cout, Cin), lambda n, t: (0, 0)),
                      pl.BlockSpec((Cout, 1), lambda n, t: (0, 0))],
            out_specs=pl.BlockSpec((pl.Squeezed(), Cout, tm), lambda n, t: (n, 0, t))),
        compiler_params=pltpu.CompilerParams(
            dimension_semantics=("parallel", "parallel"),
            vmem_limit_bytes=vmem_limit),
    )(x3, w_scaled, shift_col)

    return out3.reshape(N, Cout, H, W)


def point_conv_reference(x, weight, gamma, beta, eps=1e-5):
    """Plain-JAX reference of the PyTorch forward (training-mode BN)."""
    Cout, Cin = weight.shape[0], weight.shape[1]
    y = jnp.einsum("nchw,oc->nohw", x, weight.reshape(Cout, Cin))
    mean = y.mean(axis=(0, 2, 3), keepdims=True)
    var = y.var(axis=(0, 2, 3), keepdims=True)            # biased, like PyTorch BN normalization
    yhat = (y - mean) / jnp.sqrt(var + eps)
    out = yhat * gamma.reshape(1, -1, 1, 1) + beta.reshape(1, -1, 1, 1)
    return jnp.maximum(out, 0.0)


if __name__ == "__main__":
    key = jax.random.PRNGKey(0)
    kx, kw = jax.random.split(key)

    N, Cin, H, W = 2, 4, 16, 16
    Cout = 8

    x = jax.random.normal(kx, (N, Cin, H, W), dtype=jnp.float32)

    # Conv2d(kernel_size=1, bias=False) weight: (Cout, Cin, 1, 1).
    bound = 1.0 / (Cin ** 0.5)
    weight = jax.random.uniform(kw, (Cout, Cin, 1, 1), jnp.float32, -bound, bound)

    # BatchNorm2d default affine params.
    gamma = jnp.ones((Cout,), jnp.float32)
    beta = jnp.zeros((Cout,), jnp.float32)

    # TODO(synk): BN running_mean/running_var momentum updates (training-state buffers) are
    # not emitted; the forward output does not depend on them.
    out = point_conv(x, weight, gamma, beta)
    out = jax.block_until_ready(out)

    ref = point_conv_reference(x, weight, gamma, beta)
    assert out.shape == (N, Cout, H, W)
    assert jnp.allclose(out, ref, atol=1e-3, rtol=1e-3), "mismatch vs reference"

    print("KERNEL_OK")
</pallas_src>

<mosaic_0001>
module attributes {stable_mosaic.version = 11 : i64} {
  func.func @_stats_kernel(%arg0: i32, %arg1: i32, %arg2: memref<1x4x256xf32, #tpu.memory_space<vmem>>, %arg3: memref<1x4x1xf32, #tpu.memory_space<vmem>>, %arg4: memref<1x4x4xf32, #tpu.memory_space<vmem>>, %arg5: memref<4x1xf32, #tpu.memory_space<vmem>>, %arg6: memref<4x4xf32, #tpu.memory_space<vmem>>) attributes {dimension_semantics = [#tpu.dimension_semantics<parallel>, #tpu.dimension_semantics<arbitrary>], iteration_bounds = array<i64: 2, 1>, scalar_prefetch = 0 : i64, scratch_operands = 2 : i64, tpu.core_type = #tpu.core_type<tc>, window_params = [{transform_indices = @transform_0, window_bounds = array<i64: 1, 4, 256>}, {transform_indices = @transform_1, window_bounds = array<i64: 1, 4, 1>}, {transform_indices = @transform_2, window_bounds = array<i64: 1, 4, 4>}]} {
    %c0_i32 = arith.constant 0 : i32
    %0 = arith.cmpi eq, %arg1, %c0_i32 : i32
    %1 = arith.extui %0 : i1 to i32
    %c0_i32_0 = arith.constant 0 : i32
    %2 = arith.cmpi ne, %1, %c0_i32_0 : i32
    scf.if %2 {
      %cst_14 = arith.constant 0.000000e+00 : f32
      %17 = vector.broadcast %cst_14 : f32 to vector<4x1xf32>
      %c0_15 = arith.constant 0 : index
      %c0_16 = arith.constant 0 : index
      %18 = vector.load %arg5[%c0_15, %c0_16] : memref<4x1xf32, #tpu.memory_space<vmem>>, vector<4x1xf32>
      tpu.vector_store %arg5[%c0_15, %c0_16], %17 {strides = array<i32>} : memref<4x1xf32, #tpu.memory_space<vmem>>, vector<4x1xf32>,
      %cst_17 = arith.constant 0.000000e+00 : f32
      %19 = vector.broadcast %cst_17 : f32 to vector<4x4xf32>
      %c0_18 = arith.constant 0 : index
      %c0_19 = arith.constant 0 : index
      %20 = vector.load %arg6[%c0_18, %c0_19] : memref<4x4xf32, #tpu.memory_space<vmem>>, vector<4x4xf32>
      tpu.vector_store %arg6[%c0_18, %c0_19], %19 {strides = array<i32>} : memref<4x4xf32, #tpu.memory_space<vmem>>, vector<4x4xf32>,
    } else {
    }
    %c0 = arith.constant 0 : index
    %c0_1 = arith.constant 0 : index
    %c0_2 = arith.constant 0 : index
    %3 = vector.load %arg2[%c0, %c0_1, %c0_2] : memref<1x4x256xf32, #tpu.memory_space<vmem>>, vector<1x4x256xf32>
    %4 = vector.shape_cast %3 : vector<1x4x256xf32> to vector<4x256xf32>
    %c0_3 = arith.constant 0 : index
    %c0_4 = arith.constant 0 : index
    %5 = vector.load %arg5[%c0_3, %c0_4] : memref<4x1xf32, #tpu.memory_space<vmem>>, vector<4x1xf32>
    %cst = arith.constant dense<0.000000e+00> : vector<4xf32>
    %6 = vector.multi_reduction <add>, %4, %cst [1] : vector<4x256xf32> to vector<4xf32>
    %7 = vector.shape_cast %6 : vector<4xf32> to vector<4x1xf32>
    %8 = arith.addf %5, %7 : vector<4x1xf32>
    %c0_5 = arith.constant 0 : index
    %c0_6 = arith.constant 0 : index
    %9 = vector.load %arg5[%c0_5, %c0_6] : memref<4x1xf32, #tpu.memory_space<vmem>>, vector<4x1xf32>
    tpu.vector_store %arg5[%c0_5, %c0_6], %8 {strides = array<i32>} : memref<4x1xf32, #tpu.memory_space<vmem>>, vector<4x1xf32>,
    %c0_7 = arith.constant 0 : index
    %c0_8 = arith.constant 0 : index
    %10 = vector.load %arg6[%c0_7, %c0_8] : memref<4x4xf32, #tpu.memory_space<vmem>>, vector<4x4xf32>
    %cst_9 = arith.constant dense<0.000000e+00> : vector<4x4xf32>
    %11 = tpu.matmul %4, %4, %cst_9 {dimension_numbers = #tpu.dot_dimension_numbers<[1], [1], [0], [0], [0, 0, 1, 0], [], []>} : vector<4x256xf32>, vector<4x256xf32>, vector<4x4xf32> -> vector<4x4xf32>
    %12 = arith.addf %10, %11 : vector<4x4xf32>
    %c0_10 = arith.constant 0 : index
    %c0_11 = arith.constant 0 : index
    %13 = vector.load %arg6[%c0_10, %c0_11] : memref<4x4xf32, #tpu.memory_space<vmem>>, vector<4x4xf32>
    tpu.vector_store %arg6[%c0_10, %c0_11], %12 {strides = array<i32>} : memref<4x4xf32, #tpu.memory_space<vmem>>, vector<4x4xf32>,
    %c0_i32_12 = arith.constant 0 : i32
    %14 = arith.cmpi eq, %arg1, %c0_i32_12 : i32
    %15 = arith.extui %14 : i1 to i32
    %c0_i32_13 = arith.constant 0 : i32
    %16 = arith.cmpi ne, %15, %c0_i32_13 : i32
    scf.if %16 {
      %c0_14 = arith.constant 0 : index
      %c0_15 = arith.constant 0 : index
      %17 = vector.load %arg5[%c0_14, %c0_15] : memref<4x1xf32, #tpu.memory_space<vmem>>, vector<4x1xf32>
      %c0_16 = arith.constant 0 : index
      %c0_17 = arith.constant 0 : index
      %c0_18 = arith.constant 0 : index
      %18 = vector.load %arg3[%c0_16, %c0_17, %c0_18] : memref<1x4x1xf32, #tpu.memory_space<vmem>>, vector<1x4x1xf32>
      %19 = vector.shape_cast %18 : vector<1x4x1xf32> to vector<4x1xf32>
      %20 = vector.shape_cast %17 : vector<4x1xf32> to vector<1x4x1xf32>
      tpu.vector_store %arg3[%c0_16, %c0_17, %c0_18], %20 {strides = array<i32>} : memref<1x4x1xf32, #tpu.memory_space<vmem>>, vector<1x4x1xf32>,
      %c0_19 = arith.constant 0 : index
      %c0_20 = arith.constant 0 : index
      %21 = vector.load %arg6[%c0_19, %c0_20] : memref<4x4xf32, #tpu.memory_space<vmem>>, vector<4x4xf32>
      %c0_21 = arith.constant 0 : index
      %c0_22 = arith.constant 0 : index
      %c0_23 = arith.constant 0 : index
      %22 = vector.load %arg4[%c0_21, %c0_22, %c0_23] : memref<1x4x4xf32, #tpu.memory_space<vmem>>, vector<1x4x4xf32>
      %23 = vector.shape_cast %22 : vector<1x4x4xf32> to vector<4x4xf32>
      %24 = vector.shape_cast %21 : vector<4x4xf32> to vector<1x4x4xf32>
      tpu.vector_store %arg4[%c0_21, %c0_22, %c0_23], %24 {strides = array<i32>} : memref<1x4x4xf32, #tpu.memory_space<vmem>>, vector<1x4x4xf32>,
    } else {
    }
    return
  }
  func.func @transform_0(%arg0: i32, %arg1: i32) -> (i32, i32, i32) {
    %c0_i32 = arith.constant 0 : i32
    %c0_i32_0 = arith.constant 0 : i32
    return %arg0, %c0_i32, %arg1 : i32, i32, i32
  }
  func.func @transform_1(%arg0: i32, %arg1: i32) -> (i32, i32, i32) {
    %c0_i32 = arith.constant 0 : i32
    %c0_i32_0 = arith.constant 0 : i32
    %c0_i32_1 = arith.constant 0 : i32
    return %arg0, %c0_i32, %c0_i32_0 : i32, i32, i32
  }
  func.func @transform_2(%arg0: i32, %arg1: i32) -> (i32, i32, i32) {
    %c0_i32 = arith.constant 0 : i32
    %c0_i32_0 = arith.constant 0 : i32
    %c0_i32_1 = arith.constant 0 : i32
    return %arg0, %c0_i32, %c0_i32_0 : i32, i32, i32
  }
}

</mosaic_0001>

<bundles_post_ra>
// kernel: tpu_custom_call.1
= control target key start
LH: loop header
LB: loop body
LE: loop exit
PB: predicated region body
PF: predicated region fallthrough
CT: control target
= control target key end

     0   :  { %8 = vsyncpa [#allocation5], 0  ;;  %s774_s0 = inlined_call_operand.hbm [shape: f32[2,4,256], index: 0, kind: input, shape index: {}]   ;;  %s775_s1 = inlined_call_operand.vmem [shape: f32[2,4,1], index: 1, kind: output, shape index: {0}]   ;;  %s776_s2 = inlined_call_operand.hbm [shape: f32[2,4,4], index: 2, kind: output, shape index: {1}]  }
   0x1   :  { %10 = vsyncpa [#allocation5 + $0x1], 0 }
   0x2   :  { %11 = vsyncpa [#allocation6], 0 }
   0x3   :  { %13 = vsyncpa [#allocation6 + $0x1], 0  ;;  %s625_s9 = smov 0   ;;  %s627_s10 = smov 0  }
   0x4   :  { %s629_s11 = smov 0   ;;  %s631_s12 = smov 0  }
   0x5   :  { %s633_s13 = smov 0   ;;  %s635_s14 = smov 0  }
   0x6 LB: > { %s417_s15 = sadd.s32 4294967295, %s605_s14   ;;  %s418_s16 = sadd.s32 4294967294, %s605_s14   ;;  %s605_s14 = sphi %s635_s14, %s19_s14   ;;  %s601_s13 = sphi %s633_s13, %s788_s13   ;;  %s597_s12 = sphi %s631_s12, %s787_s12   ;;  %s593_s11 = sphi %s629_s11, %s786_s11   ;;  %s589_s10 = sphi %s627_s10, %s785_s10   ;;  %s585_s9 = sphi %s625_s9, %s784_s9  }
   0x7   : > { %s31_s17 = sadd.s32 1, %s601_s13  ;;  %s40_s18 = sadd.s32 1, %s593_s11 }
   0x8   : > { %p33_p0 = scmp.ge.s32.totalorder %s31_s17, 2  ;;  %p47_p1 = scmp.ne.s32.totalorder %s593_s11, %s589_s10 }
   0x9   : > { %p48_p2 = scmp.eq.s32.totalorder %s605_s14, 0  ;;  %p53_p3 = scmp.ne.s32.totalorder %s589_s10, %s585_s9 }
   0xa   : > { %s790_s17 = smov (%p33_p0, %s31_s17), 0  ;;  %p54_p5 = scmp.eq.s32.totalorder %s417_s15, 0 }
   0xb   : > { %p666_p4 = por %p48_p2, %p47_p1  ;;  %s35_s20 = ssub.s32 %s601_s13, %s790_s17 }
   0xc   : > { %p103_p6 = scmp.eq.s32.totalorder %s417_s15, 1  ;;  %p38_p7 = scmp.eq.s32.totalorder %s35_s20, 0 }
   0xd   : > { %p672_p8 = por %p54_p5, %p53_p3  ;;  %p109_p10 = scmp.eq.s32.totalorder %s418_s16, 1 }
   0xe   : > { %p676_p9 = por %p103_p6, %p47_p1  ;;  %p445_p13 = scmp.lt.s32.totalorder %s605_s14, 2 }
   0xf   : > { %s681_s23 = scalar_select %p38_p7, %s593_s11, %s40_s18  }
  0x10   : > { %p683_p11 = por %p109_p10, %p53_p3  ;;  %s129_s25 = sand.u32 1, %s593_s11  }
  0x11   : > { %s421_s26 = sshll.u32 %s129_s25, 3  ;;  %s432_s27 = sshll.u32 %s601_s13, 7 }
  0x12   : > { %s780_s24 = scalar_select %p683_p11, 1, 0 }
  0x13   : > { %s141_s30 = scalar_lea.hbm %s774_s0, %s432_s27  ;;  %s133_s3 = scalar_lea.vmem [#allocation4], %s421_s26 }
  0x14   : > { %s143_s4 = sshll.u32 %s133_s3, 4  ;;  %p696_p0 = pnand %p445_p13, %p666_p4  ;;  %s144_s4 = int_to_ptr.vmem [resolvable:$true] %s143_s4 }
  0x15   : > { %p424_p1 = scmp.ge.s32.totalorder %s605_s14, 1  ;;  %p148_p2 = scmp.lt.s32.totalorder %s605_s14, 3 }
  0x16   : > { %s130_s6 = scalar_lea.sflag [#allocation5], %s129_s25  ;;  %p499_p3 = pneg %p696_p0 }
  0x17   : > { %s510_s7 = scalar_lea.vmem %s144_s4, 128  ;;  %s607_s8 = smov [#allocation4]  }
  0x18   : > { %p511_p5 = scmp.ne.s32.totalorder %s144_s4, %s510_s7  ;;  %s515_s15 = sshll.u32 %s607_s8, 4  ;;  %s516_s15 = int_to_ptr.vmem [resolvable:$false] %s515_s15 }
  0x19   : > { %s517_s16 = scalar_lea.vmem %s516_s15, 256  ;;  %p518_p10 = scmp.lt.s32.totalorder %s144_s4, %s516_s15 }
  0x1a   : > { %p513_p6 = pnand %p511_p5, %p499_p3  ;;  %p519_p12 = scmp.lt.s32.totalorder %s517_s16, %s510_s7 }
  0x1c   : > { %p514_p7 = pneg %p513_p6  ;;  %p520_p4 = por %p519_p12, %p518_p10 }
  0x1e   : > { %p521_p13 = pnand %p520_p4, %p514_p7 }
  0x20   : > { %524 = shalt.err (!%p521_p13)
}
  0x21   : > { %440 = dma.hbm_to_vmem [thread:$0]  (!%p696_p0), %s141_s30, 128, %s144_s4, %s130_s6  }
  0x22   : > { %p149_p11 = pnand %p424_p1, %p148_p2 }
  0x23   : > { %s711_s18 = sand.u32 (!%p149_p11), 1, %s589_s10  }
  0x24   : > { %152 = sbr.rel (%p149_p11) target bundleno = 265 (0x109), region = 24  ;;  %s425_s19 = sshll.u32 (!%p149_p11), %s711_s18, 3 }
  0x25   : > { %s155_s20 = scalar_lea.sflag (!%p149_p11), [#allocation5], %s711_s18  ;;  %s158_s25 = scalar_lea.vmem (!%p149_p11), [#allocation4], %s425_s19 }
  0x29   : > { %576 = dma.done.wait (%p672_p8), %s155_s20, 128  }
  0x2a   : > { %578 = vsyncadd (%p672_p8), %s155_s20, 4294967168  ;;  %vm194_vm0 = vcmask 27648   ;;  %v608_v0 = vmov 0.0   ;;  %vm201_vm1 = vcmask 1043456   ;;  %v196_v1 = vld [vmem:[%s158_s25] sm:$0xff]  ;;  %vm192_vm2 = vcmask 3072  }
  0x2b   : > { %195 = vst.msk [vmem:[#allocation3] sm:$0xf] %vm194_vm0, %v608_v0  ;;  %v199_v2 = vcombine.high %v196_v1, %v196_v1  ;;  %v202_v3 = vsel %vm201_vm1, %v196_v1, 0.0  ;;  %p184_p8 = scmp.lt.s32.totalorder %s597_s12, 1  ;;  %s426_s30 = sshll.u32 %s711_s18, 2 }
  0x2c   : > { %193 = vst.msk [vmem:[#allocation2] sm:$0xf] %vm192_vm2, %v608_v0  ;;  %s429_s3 = sshll.u32 %s597_s12, 6  ;;  %s182_s4 = scalar_lea.vmem [#allocation7], %s426_s30 }
  0x2d   : > { %241 = vmatprep.subr.mxu0 %v199_v2  ;;  %275 = vmatprep.mubr.f32.mxu0 %v199_v2  ;;  %v203_v4 = vsel %vm201_vm1, %v199_v2, 0.0  ;;  %s185_s21 = scalar_select %p184_p8, %s597_s12, 1 }
  0x2e   : > { %242 = vmatpush1.xpose.msra.mxu0 %v196_v1  ;;  %v204_v5 = vadd.f32 %v203_v4, %v202_v3  ;;  %s312_s5 = sshll.u32 %s182_s4, 4  ;;  %s731_s8 = scalar_lea.hbm %s776_s2, %s429_s3  ;;  %s313_s5 = int_to_ptr.vmem [resolvable:$true] %s312_s5 }
  0x2f   : > { %s427_s26 = sshll.u32 %s185_s21, 2  ;;  %s296_s15 = scalar_lea.sflag [#allocation6], %s711_s18 }
  0x30   : > { %205 = vadd.xlane.f32.xlu0 %v204_v5  ;;  %s187_s29 = scalar_lea.vmem %s775_s1, %s427_s26  ;;  %s525_s16 = scalar_lea.vmem %s313_s5, 64 }
  0x31   : > { %276 = vmatmul.mubr.f32.vlgmr.msra.gmra.mxu0 %v196_v1  ;;  %p526_p11 = scmp.ne.s32.totalorder %s313_s5, %s525_s16  ;;  %s609_s19 = smov [#allocation7]  }
  0x32   : > { %v210_v10 = vld [vmem:[#allocation3] sm:$0xf]  ;;  %s529_s20 = sshll.u32 %s609_s19, 4  ;;  %s530_s20 = int_to_ptr.vmem [resolvable:$false] %s529_s20 }
  0x33   : > { %v197_v6 = vld [vmem:[#allocation2] sm:$0xf]  ;;  %p527_p12 = pnand %p526_p11, %p676_p9  ;;  %s531_s12 = scalar_lea.vmem %s530_s20, 128 }
  0x34   : > { %p532_p1 = scmp.lt.s32.totalorder %s313_s5, %s530_s20  ;;  %p533_p2 = scmp.lt.s32.totalorder %s531_s12, %s525_s16 }
  0x35   : > { %p528_p0 = pneg %p527_p12 }
  0x36   : > { %p534_p3 = por %p533_p2, %p532_p1 }
  0x38   : > { %p535_p5 = pnand %p534_p3, %p528_p0 }
  0xb9   : > { %v206_v7 = vpop.xlane.xlu0 %205 }
  0xba   : > { %v207_v8 = vadd.f32 %v206_v7, %v197_v6 }
  0xbc   : > { %209 = vst.msk [vmem:[#allocation2] sm:$0xf] %vm192_vm2, %v207_v8 }
  0xc3   : > { %v287_v9 = vld [vmem:[#allocation2] sm:$0xf] }
  0xc4   : > { %288 = vst.msk [vmem:[%s187_s29] sm:$0xf] %vm192_vm2, %v287_v9 }
  0xf1   : > { %v277_v11 = vpop.f32.mrf.mxu0 }
  0xf2   : > { %v281_v12 = vadd.f32 %v277_v11, %v210_v10 }
  0xf3   : > { %v279_v13 = vpop.f32.mrf.mxu0 }
  0xf4   : > { %283 = vst.msk [vmem:[#allocation3] sm:$0xf] %vm194_vm0, %v281_v12 }
  0xfb   : > { %v289_v14 = vld [vmem:[#allocation3] sm:$0xf] }
  0xfc   : > { %290 = vst.msk [vmem:[%s182_s4] sm:$0xf] %vm194_vm0, %v289_v14 }
  0xfd   : > { %538 = shalt.err (!%p535_p5)
}
  0xfe   : > { %s539_s25 = scalar_lea.hbm %s731_s8, 64  ;;  %s543_s26 = scalar_lea.hbm %s776_s2, 128 }
  0xff   : > { %p540_p6 = scmp.ne.s32.totalorder %s731_s8, %s539_s25  ;;  %p544_p4 = scmp.lt.s32.totalorder %s731_s8, %s776_s2 }
 0x100   : > { %p545_p13 = scmp.lt.s32.totalorder %s543_s26, %s539_s25 }
 0x101   : > { %p541_p7 = pnand %p540_p6, %p676_p9 }
 0x102   : > { %p546_p8 = por %p545_p13, %p544_p4 }
 0x103   : > { %p542_p10 = pneg %p541_p7 }
 0x105   : > { %p547_p11 = pnand %p546_p8, %p542_p10 }
 0x107   : > { %550 = shalt.err (!%p547_p11)
}
 0x108   : > { %435 = dma.vmem_to_hbm [thread:$0]  (%p676_p9), %s313_s5, 64, %s731_s8, %s296_s15  }
 0x109 PF: > { %s331_s29 = sand.u32 1, %s585_s9   ;;  %p782_p12 = scmp.ne.s32.totalorder %s780_s24, 0 }
 0x10a   : > { %p783_p0 = scmp.ge.s32.totalorder %s605_s14, 2  ;;  %s332_s30 = scalar_lea.sflag [#allocation6], %s331_s29 }
 0x10c   : > { %p442_p1 = pnand %p783_p0, %p782_p12 }
 0x10e   : > { %p443_p2 = pneg %p442_p1 }
 0x110   : > { %580 = dma.done.wait (%p443_p2), %s332_s30, 64  }
 0x111   : > { %582 = vsyncadd (%p443_p2), %s332_s30, 4294967232  ;;  %s19_s14 = sadd.s32 1, %s605_s14   ;;  %s784_s9 = smov %s589_s10 }
 0x112   : > { %p16_p3 = scmp.ge.s32.totalorder %s19_s14, 4   ;;  %s785_s10 = smov %s593_s11 }
 0x113   : > { %s786_s11 = smov %s681_s23  ;;  %s787_s12 = smov %s601_s13 }
 0x114   : > { %s788_s13 = smov %s790_s17  ;;  %18 = sbr.rel (!%p16_p3) target bundleno = 6 (0x6), region = 89 }
 0x119   :  { %337 = vsyncpa [#allocation5], 1 }
 0x11a   :  { %339 = vsyncpa [#allocation5 + $0x1], 1 }
 0x11b   :  { %340 = vsyncpa [#allocation6], 1 }
 0x11c   :  { %342 = vsyncpa [#allocation6 + $0x1], 1 }

</bundles_post_ra>
